<compile_context>
chip_gen: v6e
topology: v6e:2x2x1
jax: 0.10.0
libtpu: 0.0.40
codegen_flags: <defaults>
</compile_context>

<pallas_src>
import jax
import jax.numpy as jnp
from jax.experimental import pallas as pl
from jax.experimental.pallas import tpu as pltpu

_LANE = 512            # lane-dense last dim (multiple of 128)
_MAX_TILE_ROWS = 512   # 512 x 512 f32 block = 1 MiB per buffer


def _h_swish_kernel(x_ref, o_ref):
    x = x_ref[...]
    # relu6(x + 3) / 6 * x  -- pure VPU, single pass, input dtype.
    gate = jnp.clip(x + 3.0, 0.0, 6.0) * (1.0 / 6.0)
    o_ref[...] = (gate * x).astype(o_ref.dtype)


def h_swish(x: jax.Array) -> jax.Array:
    """Hard-swish, semantics identical to F.relu6(x + 3) / 6 * x."""
    orig_shape = x.shape
    total = x.size

    # Lane-dense 2-D view: (rows, _LANE), zero-padded flat tail.
    rows = pl.cdiv(total, _LANE)
    rows = ((rows + 15) // 16) * 16                  # sublane alignment (covers bf16 packing)
    tile_r = min(_MAX_TILE_ROWS, rows)
    rows = ((rows + tile_r - 1) // tile_r) * tile_r  # make grid divide evenly
    padded = rows * _LANE

    flat = x.reshape(-1)
    if padded != total:
        flat = jnp.pad(flat, (0, padded - total))
    x2 = flat.reshape(rows, _LANE)

    out = pl.pallas_call(
        _h_swish_kernel,
        out_shape=jax.ShapeDtypeStruct((rows, _LANE), x.dtype),
        grid=(rows // tile_r,),
        in_specs=[pl.BlockSpec((tile_r, _LANE), lambda i: (i, 0))],
        out_specs=pl.BlockSpec((tile_r, _LANE), lambda i: (i, 0)),
        compiler_params=pltpu.CompilerParams(
            dimension_semantics=("parallel",),
        ),
    )(x2)

    return out.reshape(-1)[:total].reshape(orig_shape)


if __name__ == "__main__":
    key = jax.random.PRNGKey(0)
    # NCHW, small shape consistent with a conv-net activation.
    x = jax.random.normal(key, (2, 4, 16, 16), dtype=jnp.float32) * 4.0

    y = h_swish(x)
    y = jax.block_until_ready(y)

    # Reference check in plain JAX.
    ref = jnp.clip(x + 3.0, 0.0, 6.0) / 6.0 * x
    assert y.shape == x.shape and y.dtype == x.dtype
    assert jnp.allclose(y, ref, atol=1e-6, rtol=1e-6)

    print("KERNEL_OK")
</pallas_src>

<mosaic_0001>
module attributes {stable_mosaic.version = 11 : i64} {
  func.func @_h_swish_kernel(%arg0: i32, %arg1: memref<16x512xf32, #tpu.memory_space<vmem>>, %arg2: memref<16x512xf32, #tpu.memory_space<vmem>>) attributes {dimension_semantics = [#tpu.dimension_semantics<parallel>], iteration_bounds = array<i64: 1>, scalar_prefetch = 0 : i64, scratch_operands = 0 : i64, tpu.core_type = #tpu.core_type<tc>, window_params = [{transform_indices = @transform_0, window_bounds = array<i64: 16, 512>}, {transform_indices = @transform_1, window_bounds = array<i64: 16, 512>}]} {
    %c0 = arith.constant 0 : index
    %c0_0 = arith.constant 0 : index
    %0 = vector.load %arg1[%c0, %c0_0] : memref<16x512xf32, #tpu.memory_space<vmem>>, vector<16x512xf32>
    %cst = arith.constant 3.000000e+00 : f32
    %1 = vector.broadcast %cst : f32 to vector<16x512xf32>
    %2 = arith.addf %0, %1 : vector<16x512xf32>
    %cst_1 = arith.constant 0.000000e+00 : f32
    %cst_2 = arith.constant 6.000000e+00 : f32
    %3 = vector.broadcast %cst_1 : f32 to vector<16x512xf32>
    %4 = arith.maximumf %3, %2 : vector<16x512xf32>
    %5 = vector.broadcast %cst_2 : f32 to vector<16x512xf32>
    %6 = arith.minimumf %5, %4 : vector<16x512xf32>
    %cst_3 = arith.constant 0.166666672 : f32
    %7 = vector.broadcast %cst_3 : f32 to vector<16x512xf32>
    %8 = arith.mulf %6, %7 : vector<16x512xf32>
    %9 = arith.mulf %8, %0 : vector<16x512xf32>
    %c0_4 = arith.constant 0 : index
    %c0_5 = arith.constant 0 : index
    %10 = vector.load %arg2[%c0_4, %c0_5] : memref<16x512xf32, #tpu.memory_space<vmem>>, vector<16x512xf32>
    tpu.vector_store %arg2[%c0_4, %c0_5], %9 {strides = array<i32>} : memref<16x512xf32, #tpu.memory_space<vmem>>, vector<16x512xf32>,
    return
  }
  func.func @transform_0(%arg0: i32) -> (i32, i32) {
    %c0_i32 = arith.constant 0 : i32
    %c0_i32_0 = arith.constant 0 : i32
    return %arg0, %c0_i32 : i32, i32
  }
  func.func @transform_1(%arg0: i32) -> (i32, i32) {
    %c0_i32 = arith.constant 0 : i32
    %c0_i32_0 = arith.constant 0 : i32
    return %arg0, %c0_i32 : i32, i32
  }
}

</mosaic_0001>

<bundles_post_ra>
// kernel: tpu_custom_call.1
= control target key start
LH: loop header
LB: loop body
LE: loop exit
PB: predicated region body
PF: predicated region fallthrough
CT: control target
= control target key end

     0   :  { %6 = vsyncpa [#allocation3], 0  ;;  %s170_s0 = inlined_call_operand.hbm [shape: f32[16,512], index: 0, kind: input, shape index: {}]   ;;  %s171_s1 = inlined_call_operand.hbm [shape: f32[16,512], index: 1, kind: output, shape index: {}]  }
   0x1   :  { %7 = vsyncpa [#allocation4], 0  ;;  %s144_s6 = smov [#allocation2]  }
   0x2   :  { %s13_s7 = sshll.u32 %s144_s6, 4  ;;  %s14_s7 = int_to_ptr.vmem [resolvable:$true] %s13_s7 }
   0x3   :  { %s108_s8 = scalar_lea.vmem %s14_s7, 1024  ;;  %p113_p1 = scmp.lt.s32.totalorder %s14_s7, %s14_s7 }
   0x4   :  { %p109_p0 = scmp.ne.s32.totalorder %s14_s7, %s108_s8  ;;  %p114_p2 = scmp.lt.s32.totalorder %s108_s8, %s108_s8 }
   0x6   :  { %p115_p3 = por %p114_p2, %p113_p1 }
   0x8   :  { %p116_p4 = pnand %p115_p3, %p109_p0 }
   0xa   :  { %119 = shalt.err (!%p116_p4)
}
   0xb   :  { %s145_s9 = smov 512   ;;  %s146_s10 = smov 32  }
   0xc   :  { %19 = dma.hbm_to_vmem [thread:$0]  %s170_s0, 1024, %s14_s7, [#allocation3], %s145_s9, %s145_s9, %s146_s10  }
   0xd   :  { %140 = dma.done.wait [#allocation3], 1024  }
   0xe   :  { %141 = vsyncadd [#allocation3], 4294966272  ;;  %v23_v0 = vld [vmem:[#allocation2] sm:$0xff]  ;;  %v24_v1 = vld [vmem:[#allocation2 + $0x8] sm:$0xff]  ;;  %s147_s0 = smov [#allocation5]  }
   0xf   :  { %v25_v2 = vld [vmem:[#allocation2 + $0x10] sm:$0xff]  ;;  %v31_v3 = vadd.f32 3.0, %v23_v0  ;;  %v32_v4 = vadd.f32 3.0, %v24_v1  ;;  %v26_v6 = vld [vmem:[#allocation2 + $0x18] sm:$0xff]  ;;  %v27_v7 = vld [vmem:[#allocation2 + $0x20] sm:$0xff]  ;;  %s84_s13 = sshll.u32 %s147_s0, 4  ;;  %s85_s13 = int_to_ptr.vmem [resolvable:$true] %s84_s13 }
  0x10   :  { %v33_v5 = vadd.f32 3.0, %v25_v2  ;;  %v28_v8 = vld [vmem:[#allocation2 + $0x28] sm:$0xff]  ;;  %v34_v9 = vadd.f32 3.0, %v26_v6  ;;  %v35_v10 = vadd.f32 3.0, %v27_v7  ;;  %v29_v12 = vld [vmem:[#allocation2 + $0x30] sm:$0xff]  ;;  %v30_v13 = vld [vmem:[#allocation2 + $0x38] sm:$0xff]  ;;  %p125_p6 = scmp.lt.s32.totalorder %s85_s13, %s85_s13 }
  0x11   :  { %v36_v11 = vadd.f32 3.0, %v28_v8  ;;  %v39_v14 = vmax.f32 %v31_v3, 0.0  ;;  %v40_v15 = vmax.f32 %v32_v4, 0.0  ;;  %v37_v17 = vadd.f32 3.0, %v29_v12  ;;  %s120_s14 = scalar_lea.vmem %s85_s13, 1024 }
  0x12   :  { %v41_v16 = vmax.f32 %v33_v5, 0.0  ;;  %v42_v18 = vmax.f32 %v34_v9, 0.0  ;;  %v43_v19 = vmax.f32 %v35_v10, 0.0  ;;  %v38_v21 = vadd.f32 3.0, %v30_v13  ;;  %p121_p5 = scmp.ne.s32.totalorder %s85_s13, %s120_s14  ;;  %p126_p7 = scmp.lt.s32.totalorder %s120_s14, %s120_s14 }
  0x13   :  { %v44_v20 = vmax.f32 %v36_v11, 0.0  ;;  %v47_v22 = vmin.f32 %v39_v14, 6.0  ;;  %v48_v23 = vmin.f32 %v40_v15, 6.0  ;;  %v45_v25 = vmax.f32 %v37_v17, 0.0 }
  0x14   :  { %v49_v24 = vmin.f32 %v41_v16, 6.0  ;;  %v50_v26 = vmin.f32 %v42_v18, 6.0  ;;  %v51_v27 = vmin.f32 %v43_v19, 6.0  ;;  %v46_v29 = vmax.f32 %v38_v21, 0.0  ;;  %p127_p8 = por %p126_p7, %p125_p6 }
  0x15   :  { %v52_v28 = vmin.f32 %v44_v20, 6.0  ;;  %v55_v30 = vmul.f32 0.16666667, %v47_v22  ;;  %v56_v31 = vmul.f32 0.16666667, %v48_v23  ;;  %v53_v39 = vmin.f32 %v45_v25, 6.0 }
  0x16   :  { %v57_v32 = vmul.f32 0.16666667, %v49_v24  ;;  %v58_v33 = vmul.f32 0.16666667, %v50_v26  ;;  %v59_v34 = vmul.f32 0.16666667, %v51_v27  ;;  %p128_p9 = pnand %p127_p8, %p121_p5 }
  0x17   :  { %v60_v35 = vmul.f32 0.16666667, %v52_v28  ;;  %v63_v36 = vmul.f32 %v55_v30, %v23_v0  ;;  %v64_v37 = vmul.f32 %v56_v31, %v24_v1  ;;  %v54_v43 = vmin.f32 %v46_v29, 6.0 }
  0x18   :  { %v65_v38 = vmul.f32 %v57_v32, %v25_v2  ;;  %v66_v40 = vmul.f32 %v58_v33, %v26_v6  ;;  %v67_v41 = vmul.f32 %v59_v34, %v27_v7  ;;  %v61_v44 = vmul.f32 0.16666667, %v53_v39 }
  0x19   :  { %v68_v42 = vmul.f32 %v60_v35, %v28_v8  ;;  %71 = vst [vmem:[#allocation5] sm:$0xff] %v63_v36  ;;  %72 = vst [vmem:[#allocation5 + $0x8] sm:$0xff] %v64_v37  ;;  %v62_v45 = vmul.f32 0.16666667, %v54_v43 }
  0x1a   :  { %73 = vst [vmem:[#allocation5 + $0x10] sm:$0xff] %v65_v38  ;;  %74 = vst [vmem:[#allocation5 + $0x18] sm:$0xff] %v66_v40  ;;  %v69_v46 = vmul.f32 %v61_v44, %v29_v12 }
  0x1b   :  { %75 = vst [vmem:[#allocation5 + $0x20] sm:$0xff] %v67_v41  ;;  %76 = vst [vmem:[#allocation5 + $0x28] sm:$0xff] %v68_v42  ;;  %v70_v47 = vmul.f32 %v62_v45, %v30_v13 }
  0x1c   :  { %77 = vst [vmem:[#allocation5 + $0x30] sm:$0xff] %v69_v46 }
  0x1d   :  { %78 = vst [vmem:[#allocation5 + $0x38] sm:$0xff] %v70_v47 }
  0x1e   :  { %131 = shalt.err (!%p128_p9)
}
  0x1f   :  { %90 = dma.vmem_to_hbm [thread:$0]  %s85_s13, 1024, %s171_s1, [#allocation4], %s145_s9, %s145_s9, %s146_s10  }
  0x20   :  { %142 = dma.done.wait [#allocation4], 1024  }
  0x21   :  { %143 = vsyncadd [#allocation4], 4294966272 }
  0x22   :  { %94 = vsyncpa [#allocation3], 1 }
  0x23   :  { %95 = vsyncpa [#allocation4], 1 }

</bundles_post_ra>
